<compile_context>
chip_gen: v7x
topology: tpu7x:2x2x1
jax: 0.10.0
libtpu: 0.0.40
codegen_flags: <defaults>
</compile_context>

<pallas_src>
import functools

import jax
import jax.numpy as jnp
import numpy as np
from jax.experimental import pallas as pl
from jax.experimental.pallas import tpu as pltpu

# ---------------- model config (mirrors CNN.__init__ arguments) -------------
IN_SIZE = (4, 16, 16)          # (C, H, W)
OUT_CLASSES = 10
CHANNELS = [8, 8]              # N conv layers
POOL_EVERY = 2                 # P
HIDDEN_DIMS = [32]             # M hidden FC layers
CONV_PARAMS = dict(kernel_size=3, padding=1, stride=1)
# activation: relu, pooling: max with kernel_size=2 (stride defaults to 2)

CIN_PAD = 8                    # conv input channels padded to one sublane tile


def _round_up(v, m):
    return (v + m - 1) // m * m


# ---------------- one-time pltpu.roll sign calibration ----------------------
def _probe_roll_sign(size=384):
    """shift(v, d): out[:, i] = v[:, i + d] is implemented as
    pltpu.roll(v, (sign * d) % size, axis=1).  Calibrate `sign` once; raise if
    neither sign matches (no silent fallback to a slow slice-based shift)."""
    base = np.tile(np.arange(size, dtype=np.float32), (8, 1))
    x = jnp.asarray(base)
    want = (np.roll(base, -19, axis=1) + 2.0 * np.roll(base, 19, axis=1)
            + 4.0 * np.roll(base, -1, axis=1))
    for sign in (-1, 1):
        def probe(x_ref, o_ref, sign=sign):
            v = x_ref[...]

            def sh(delta):
                return pltpu.roll(v, shift=(sign * delta) % size, axis=1)

            o_ref[...] = sh(19) + 2.0 * sh(-19) + 4.0 * sh(1)

        got = np.asarray(jax.block_until_ready(pl.pallas_call(
            probe, out_shape=jax.ShapeDtypeStruct((8, size), jnp.float32))(x)))
        if np.array_equal(got, want):
            return sign
    raise RuntimeError("pltpu.roll rotation semantics did not match either "
                       "sign; refusing to fall back to a slow shift path")


# ---------------- the fused per-sample kernel --------------------------------
def _cnn_fused_kernel(x_ref, w1_ref, b1_ref, w2_ref, b2_ref, mask_ref,
                      sel2_ref, dmask_ref, wf1_ref, bf1_ref, wf2_ref, bf2_ref,
                      out_ref, *, roll_sign, wpad, ksize):
    L = x_ref.shape[-1]          # lane-padded flattened padded-image length
    kc = ksize // 2

    def shift(v, delta):
        # out[:, i] = v[:, i + delta]  (cyclic; the per-image padding ring and
        # the lane-pad tail absorb all wrap-around for interior columns)
        d = (roll_sign * delta) % L
        if d == 0:
            return v
        return pltpu.roll(v, shift=d, axis=1)

    def conv_taps(inp):
        # Stack the 9 taps along the contraction dim -> ONE matmul per conv.
        taps = [shift(inp, (kh - kc) * wpad + (kw - kc))
                for kh in range(ksize) for kw in range(ksize)]
        return jnp.concatenate(taps, axis=0).astype(jnp.bfloat16)  # (9*8, L)

    x0 = x_ref[...]                                   # (8, L) f32, zero ring

    # conv1 -> relu; mask re-zeroes the padding ring (it doubles as conv2's
    # zero padding) and the lane-alignment tail.
    h1 = jnp.maximum(jnp.dot(w1_ref[...], conv_taps(x0),
                             preferred_element_type=jnp.float32)
                     + b1_ref[...], 0.0) * mask_ref[...]
    # conv2 -> relu (ring/tail garbage is finite and never read downstream)
    h2 = jnp.maximum(jnp.dot(w2_ref[...], conv_taps(h1),
                             preferred_element_type=jnp.float32)
                     + b2_ref[...], 0.0)

    # 2x2 / stride-2 max pool: max over the 4 taps of each window
    m = jnp.maximum(jnp.maximum(h2, shift(h2, 1)),
                    jnp.maximum(shift(h2, wpad), shift(h2, wpad + 1)))

    # Gather the pooled window anchors with one lane-dense 0/1 matmul that
    # replicates the pooled map across C2 lane-blocks; the block-diagonal mask
    # + sublane sum then yields the torch NCHW flatten order as a single
    # (1, C2*Ho*Wo) feature row -- no in-kernel reshape/transpose needed.
    pooled2 = jnp.dot(m.astype(jnp.bfloat16), sel2_ref[...],
                      preferred_element_type=jnp.float32)      # (c2, c2*sp)
    feat = jnp.sum(pooled2 * dmask_ref[...], axis=0, keepdims=True)  # (1, 512)

    # MLP head (tiny matmuls, kept f32 for accuracy headroom)
    z = jnp.maximum(jnp.dot(feat, wf1_ref[...],
                            preferred_element_type=jnp.float32)
                    + bf1_ref[...], 0.0)
    logits = (jnp.dot(z, wf2_ref[...], preferred_element_type=jnp.float32)
              + bf2_ref[...])                                   # (1, 128)
    out_ref[0] = logits


# ---------------- one-time parameter / constant packing ----------------------
def pack_params(params):
    """Repack PyTorch-layout parameters and the constant tables into the fused
    kernel's layout (conv taps stacked along K, bf16 matmul operands, lane-
    padded classifier output).  Done once, outside the jitted forward; all
    tables are batch-independent."""
    in_c, H, W = IN_SIZE
    K = CONV_PARAMS["kernel_size"]
    pad = CONV_PARAMS["padding"]
    hpad, wpad = H + 2 * pad, W + 2 * pad
    img = hpad * wpad
    L = _round_up(img, 128)
    ho, wo = H // 2, W // 2
    sp = ho * wo

    (w1, b1), (w2, b2) = params["conv"]
    c1, c2 = int(w1.shape[0]), int(w2.shape[0])

    def pack_conv(w):
        w = np.asarray(w)                              # (cout, cin, K, K)
        cout, cin = w.shape[0], w.shape[1]
        wt = np.transpose(w, (0, 2, 3, 1)).reshape(cout, K * K, cin)
        out = np.zeros((cout, K * K, CIN_PAD), np.float32)
        out[:, :, :cin] = wt                            # rows t*8 + ci
        return jnp.asarray(out.reshape(cout, K * K * CIN_PAD),
                           dtype=jnp.bfloat16)

    packed = {
        "w1": pack_conv(w1),
        "b1": jnp.asarray(np.asarray(b1).reshape(c1, 1)),
        "w2": pack_conv(w2),
        "b2": jnp.asarray(np.asarray(b2).reshape(c2, 1)),
    }

    # interior (non-ring, non-tail) mask over the flattened padded grid
    mask = np.zeros((1, L), np.float32)
    for hh in range(pad, hpad - pad):
        s = hh * wpad + pad
        mask[0, s:s + W] = 1.0
    packed["mask"] = jnp.asarray(mask)

    # pool-anchor selection, replicated across the C2 lane blocks (0/1, exact
    # in bf16); anchors are the padded coords (2i+pad, 2j+pad)
    sel2 = np.zeros((L, c2 * sp), np.float32)
    for i in range(ho):
        for j in range(wo):
            col = (2 * i + pad) * wpad + (2 * j + pad)
            s = i * wo + j
            for c in range(c2):
                sel2[col, c * sp + s] = 1.0
    packed["sel2"] = jnp.asarray(sel2, dtype=jnp.bfloat16)

    # block-diagonal channel mask used to fold the replicated pooled map into
    # the torch (C2, Ho, Wo) flatten order
    dmask = np.zeros((c2, c2 * sp), np.float32)
    for c in range(c2):
        dmask[c, c * sp:(c + 1) * sp] = 1.0
    packed["dmask"] = jnp.asarray(dmask)

    (wf1, bf1), (wf2, bf2) = params["fc"]              # torch layout (out, in)
    packed["wf1"] = jnp.asarray(np.asarray(wf1).T)     # (C2*Ho*Wo, D1) f32
    packed["bf1"] = jnp.asarray(np.asarray(bf1).reshape(1, -1))
    wf2t = np.asarray(wf2).T                           # (D1, out_classes)
    npad = _round_up(wf2t.shape[1], 128)
    wf2p = np.zeros((wf2t.shape[0], npad), np.float32)
    wf2p[:, :wf2t.shape[1]] = wf2t
    bf2p = np.zeros((1, npad), np.float32)
    bf2p[0, :wf2t.shape[1]] = np.asarray(bf2)
    packed["wf2"] = jnp.asarray(wf2p)                  # lane-padded logits
    packed["bf2"] = jnp.asarray(bf2p)
    return packed


def _const_spec(a):
    zeros = (0,) * a.ndim
    return pl.BlockSpec(a.shape, lambda i, _z=zeros: _z)


# ---------------- jitted forward (single pallas_call, batch grid) ------------
def make_forward(roll_sign):
    K = CONV_PARAMS["kernel_size"]
    pad = CONV_PARAMS["padding"]
    # fused kernel is specialised to this architecture configuration
    assert (K, pad, CONV_PARAMS["stride"]) == (3, 1, 1)
    assert len(CHANNELS) == 2 and POOL_EVERY == 2 and len(HIDDEN_DIMS) == 1

    def forward(x, packed):
        n, in_c, H, W = x.shape
        hpad, wpad = H + 2 * pad, W + 2 * pad
        img = hpad * wpad
        L = packed["mask"].shape[1]
        nclass_pad = packed["wf2"].shape[1]

        # host-side packing: NCHW -> per-sample channel-padded, spatially
        # padded, lane-padded slab (n*8, L); XLA fuses the pads/reshape and
        # allow_input_fusion lets it fold into the pallas_call's input DMA.
        xp = jnp.pad(x, ((0, 0), (0, CIN_PAD - in_c), (pad, pad), (pad, pad)))
        xs = jnp.pad(xp.reshape(n * CIN_PAD, img), ((0, 0), (0, L - img)))

        kernel = functools.partial(_cnn_fused_kernel, roll_sign=roll_sign,
                                   wpad=wpad, ksize=K)
        consts = [packed[k] for k in ("w1", "b1", "w2", "b2", "mask", "sel2",
                                      "dmask", "wf1", "bf1", "wf2", "bf2")]

        out = pl.pallas_call(
            kernel,
            out_shape=jax.ShapeDtypeStruct((n, 1, nclass_pad), jnp.float32),
            grid=(n,),
            in_specs=[pl.BlockSpec((CIN_PAD, L), lambda i: (i, 0))]
                     + [_const_spec(a) for a in consts],
            out_specs=pl.BlockSpec((1, 1, nclass_pad), lambda i: (i, 0, 0)),
            compiler_params=pltpu.CompilerParams(
                dimension_semantics=("parallel",),
                allow_input_fusion=[True] + [False] * len(consts)),
        )(xs, *consts)
        return out.reshape(n, nclass_pad)[:, :OUT_CLASSES]

    return jax.jit(forward)


# ---------------- deterministic parameter init --------------------------------
def init_params(key):
    params = {"conv": [], "fc": []}
    K = CONV_PARAMS["kernel_size"]
    full_channels = [IN_SIZE[0]] + list(CHANNELS)
    keys = jax.random.split(key, 2 * (len(CHANNELS) + len(HIDDEN_DIMS) + 1))
    ki = 0
    for i in range(len(CHANNELS)):
        cin, cout = full_channels[i], full_channels[i + 1]
        scale = 1.0 / np.sqrt(cin * K * K)
        w = jax.random.uniform(keys[ki], (cout, cin, K, K), jnp.float32, -scale, scale)
        b = jax.random.uniform(keys[ki + 1], (cout,), jnp.float32, -scale, scale)
        params["conv"].append((w, b))
        ki += 2
    h, w_ = IN_SIZE[1], IN_SIZE[2]
    n_pools = len(CHANNELS) // POOL_EVERY
    for _ in range(n_pools):
        h, w_ = h // 2, w_ // 2
    in_dim = CHANNELS[-1] * h * w_
    dims = list(HIDDEN_DIMS) + [OUT_CLASSES]
    prev = in_dim
    for d in dims:
        scale = 1.0 / np.sqrt(prev)
        w = jax.random.uniform(keys[ki], (d, prev), jnp.float32, -scale, scale)
        b = jax.random.uniform(keys[ki + 1], (d,), jnp.float32, -scale, scale)
        params["fc"].append((w, b))
        prev = d
        ki += 2
    return params


# ---------------- pure-JAX reference for verification --------------------------
def reference_forward(x, params):
    h = x
    for i, (w, b) in enumerate(params["conv"]):
        h = jax.lax.conv_general_dilated(
            h, w, window_strides=(CONV_PARAMS["stride"],) * 2,
            padding=((CONV_PARAMS["padding"],) * 2,) * 2,
            dimension_numbers=("NCHW", "OIHW", "NCHW"),
            precision=jax.lax.Precision.HIGHEST)
        h = jnp.maximum(h + b.reshape(1, -1, 1, 1), 0.0)
        if (i + 1) % POOL_EVERY == 0:
            h = jax.lax.reduce_window(h, -jnp.inf, jax.lax.max,
                                      (1, 1, 2, 2), (1, 1, 2, 2), "VALID")
    f = h.reshape(h.shape[0], -1)
    out = f
    n_fc = len(params["fc"])
    for j, (w, b) in enumerate(params["fc"]):
        out = jnp.dot(out, w.T, precision=jax.lax.Precision.HIGHEST) + b
        if j < n_fc - 1:
            out = jnp.maximum(out, 0.0)
    return out


if __name__ == "__main__":
    batch = 2
    x = jax.random.normal(jax.random.PRNGKey(0),
                          (batch,) + IN_SIZE, dtype=jnp.float32)
    params = init_params(jax.random.PRNGKey(42))
    packed = pack_params(params)

    roll_sign = _probe_roll_sign()
    cnn_forward = make_forward(roll_sign)

    out = jax.block_until_ready(cnn_forward(x, packed))
    assert out.shape == (batch, OUT_CLASSES)

    ref = jax.block_until_ready(reference_forward(x, params))
    np.testing.assert_allclose(np.asarray(out), np.asarray(ref),
                               rtol=2e-2, atol=2e-2)
    print("KERNEL_OK")
</pallas_src>

<mosaic_0001>
module attributes {stable_mosaic.version = 11 : i64} {
  func.func @probe(%arg0: memref<8x384xf32, #tpu.memory_space<vmem>>, %arg1: memref<8x384xf32, #tpu.memory_space<vmem>>) attributes {dimension_semantics = [], scalar_prefetch = 0 : i64, scratch_operands = 0 : i64, tpu.core_type = #tpu.core_type<tc>} {
    %c0 = arith.constant 0 : index
    %c0_0 = arith.constant 0 : index
    %0 = vector.load %arg0[%c0, %c0_0] : memref<8x384xf32, #tpu.memory_space<vmem>>, vector<8x384xf32>
    %c365_i32 = arith.constant 365 : i32
    %1 = tpu.dynamic_rotate %0 by %c365_i32 dim 1 : vector<8x384xf32>, i32 -> vector<8x384xf32>
    %c19_i32 = arith.constant 19 : i32
    %2 = tpu.dynamic_rotate %0 by %c19_i32 dim 1 : vector<8x384xf32>, i32 -> vector<8x384xf32>
    %cst = arith.constant 2.000000e+00 : f32
    %3 = vector.broadcast %cst : f32 to vector<8x384xf32>
    %4 = arith.mulf %3, %2 : vector<8x384xf32>
    %5 = arith.addf %1, %4 : vector<8x384xf32>
    %c383_i32 = arith.constant 383 : i32
    %6 = tpu.dynamic_rotate %0 by %c383_i32 dim 1 : vector<8x384xf32>, i32 -> vector<8x384xf32>
    %cst_1 = arith.constant 4.000000e+00 : f32
    %7 = vector.broadcast %cst_1 : f32 to vector<8x384xf32>
    %8 = arith.mulf %7, %6 : vector<8x384xf32>
    %9 = arith.addf %5, %8 : vector<8x384xf32>
    %c0_2 = arith.constant 0 : index
    %c0_3 = arith.constant 0 : index
    %10 = vector.load %arg1[%c0_2, %c0_3] : memref<8x384xf32, #tpu.memory_space<vmem>>, vector<8x384xf32>
    tpu.vector_store %arg1[%c0_2, %c0_3], %9 {strides = array<i32>} : memref<8x384xf32, #tpu.memory_space<vmem>>, vector<8x384xf32>,
    return
  }
}

</mosaic_0001>

<bundles_post_ra>
// kernel: tpu_custom_call.1
= control target key start
LH: loop header
LB: loop body
LE: loop exit
PB: predicated region body
PF: predicated region fallthrough
CT: control target
= control target key end

     0   :  { %6 = vsyncpa [#allocation3], 0  ;;  %s181_s0 = inlined_call_operand.hbm [shape: f32[8,384], index: 0, kind: input, shape index: {}]   ;;  %s182_s1 = inlined_call_operand.hbm [shape: f32[8,384], index: 1, kind: output, shape index: {}]  }
   0x1   :  { %7 = vsyncpa [#allocation4], 0  ;;  %s139_s6 = smov [#allocation2]   ;;  %s91_s10 = scalar_lea.hbm %s181_s0, 384 }
   0x2   :  { %s14_s7 = sshll.u32 %s139_s6, 4  ;;  %p92_p0 = scmp.ne.s32.totalorder %s181_s0, %s91_s10  ;;  %s15_s7 = int_to_ptr.vmem [resolvable:$true] %s14_s7 }
   0x3   :  { %p95_p1 = scmp.lt.u32.totalorder %s91_s10, %s181_s0 }
   0x5   :  { %p97_p2 = pnand %p95_p1, %p92_p0 }
   0x7   :  { %100 = shalt.err (!%p97_p2)
}
   0x8   :  { %s101_s15 = scalar_lea.vmem %s15_s7, 384  ;;  %p106_p4 = scmp.lt.s32.totalorder %s15_s7, %s15_s7 }
   0x9   :  { %p102_p3 = scmp.ne.s32.totalorder %s15_s7, %s101_s15  ;;  %p107_p5 = scmp.lt.s32.totalorder %s101_s15, %s101_s15 }
   0xb   :  { %p108_p6 = por %p107_p5, %p106_p4 }
   0xd   :  { %p109_p7 = pnand %p108_p6, %p102_p3 }
   0xf   :  { %112 = shalt.err (!%p109_p7)
}
  0x10   :  { %17 = dma.hbm_to_vmem [thread:$0]  %s181_s0, 384, %s15_s7, [#allocation3]  }
  0x11   :  { %135 = dma.done.wait [#allocation3], 384  }
  0x12   :  { %136 = vsyncadd [#allocation3], 4294966912  ;;  %v23_v0 = vld [vmem:[#allocation2 + $0x10] sm:$0xff]  ;;  %v21_v1 = vld [vmem:[#allocation2] sm:$0xff]  ;;  %s140_s18 = smov 19   ;;  %s141_s19 = smov 109   ;;  %v30_v3 = vlaneseq }
  0x13   :  { %40 = vrot.lane.b32.xlu1 %v23_v0, %s140_s18  ;;  %36 = vrot.lane.b32.xlu0 %v21_v1, %s140_s18  ;;  %v22_v2 = vld [vmem:[#allocation2 + $0x8] sm:$0xff]  ;;  %s142_s20 = smov 127   ;;  %s143_s0 = smov [#allocation5]  }
  0x14   :  { %v31_v6 = vand.u32 127, %v30_v3  ;;  %s77_s21 = sshll.u32 %s143_s0, 4  ;;  %s78_s21 = int_to_ptr.vmem [resolvable:$true] %s77_s21 }
  0x15   :  { %s113_s22 = scalar_lea.vmem %s78_s21, 384  ;;  %p118_p9 = scmp.lt.s32.totalorder %s78_s21, %s78_s21 }
  0x16   :  { %vm42_vm0 = vcmp.lt.s32.totalorder %v31_v6, 19  ;;  %vm32_vm1 = vcmp.lt.s32.totalorder %v31_v6, 109  ;;  %vm58_vm2 = vcmp.lt.s32.totalorder %v31_v6, 127  ;;  %p114_p8 = scmp.ne.s32.totalorder %s78_s21, %s113_s22  ;;  %p119_p10 = scmp.lt.s32.totalorder %s113_s22, %s113_s22 }
  0x17   :  { %24 = vrot.lane.b32.xlu1 %v21_v1, %s141_s19  ;;  %38 = vrot.lane.b32.xlu0 %v22_v2, %s140_s18 }
  0x18   :  { %p120_p11 = por %p119_p10, %p118_p9 }
  0x1a   :  { %p121_p12 = pnand %p120_p11, %p114_p8 }
  0x1b   :  { %28 = vrot.lane.b32.xlu1 %v23_v0, %s141_s19  ;;  %26 = vrot.lane.b32.xlu0 %v22_v2, %s141_s19 }
  0x1f   :  { %54 = vrot.lane.b32.xlu1 %v22_v2, %s142_s20  ;;  %52 = vrot.lane.b32.xlu0 %v21_v1, %s142_s20 }
  0x23   :  { %56 = vrot.lane.b32.xlu0 %v23_v0, %s142_s20 }
  0x85   :  { %v41_v4 = vpop.permute.xlu1 %40  ;;  %v37_v5 = vpop.permute.xlu0 %36 }
  0x86   :  { %v45_v11 = vsel %vm42_vm0, %v41_v4, %v37_v5 }
  0x87   :  { %v46_v13 = vmul.f32 2.0, %v45_v11 }
  0x89   :  { %v25_v7 = vpop.permute.xlu1 %24  ;;  %v39_v8 = vpop.permute.xlu0 %38 }
  0x8a   :  { %v43_v16 = vsel %vm42_vm0, %v39_v8, %v41_v4  ;;  %v44_v17 = vsel %vm42_vm0, %v37_v5, %v39_v8 }
  0x8b   :  { %v47_v23 = vmul.f32 2.0, %v44_v17  ;;  %v48_v24 = vmul.f32 2.0, %v43_v16 }
  0x8d   :  { %v29_v9 = vpop.permute.xlu1 %28  ;;  %v27_v10 = vpop.permute.xlu0 %26 }
  0x8e   :  { %v34_v12 = vsel %vm32_vm1, %v25_v7, %v27_v10  ;;  %v35_v21 = vsel %vm32_vm1, %v29_v9, %v25_v7  ;;  %v33_v22 = vsel %vm32_vm1, %v27_v10, %v29_v9 }
  0x8f   :  { %v49_v19 = vadd.f32 %v46_v13, %v34_v12  ;;  %v51_v29 = vadd.f32 %v48_v24, %v35_v21  ;;  %v50_v30 = vadd.f32 %v47_v23, %v33_v22 }
  0x91   :  { %v55_v14 = vpop.permute.xlu1 %54  ;;  %v53_v15 = vpop.permute.xlu0 %52 }
  0x92   :  { %v60_v18 = vsel %vm58_vm2, %v53_v15, %v55_v14 }
  0x93   :  { %v62_v20 = vmul.f32 4.0, %v60_v18 }
  0x95   :  { %v65_v25 = vadd.f32 %v62_v20, %v49_v19  ;;  %v57_v26 = vpop.permute.xlu0 %56 }
  0x96   :  { %v59_v27 = vsel %vm58_vm2, %v55_v14, %v57_v26  ;;  %v61_v28 = vsel %vm58_vm2, %v57_v26, %v53_v15 }
  0x97   :  { %68 = vst [vmem:[#allocation5] sm:$0xff] %v65_v25  ;;  %v63_v31 = vmul.f32 4.0, %v59_v27  ;;  %v64_v32 = vmul.f32 4.0, %v61_v28 }
  0x99   :  { %v66_v33 = vadd.f32 %v63_v31, %v50_v30  ;;  %v67_v34 = vadd.f32 %v64_v32, %v51_v29 }
  0x9b   :  { %69 = vst [vmem:[#allocation5 + $0x8] sm:$0xff] %v66_v33  ;;  %70 = vst [vmem:[#allocation5 + $0x10] sm:$0xff] %v67_v34 }
  0x9c   :  { %124 = shalt.err (!%p121_p12)
}
  0x9d   :  { %s125_s25 = scalar_lea.hbm %s182_s1, 384 }
  0x9e   :  { %p126_p13 = scmp.ne.s32.totalorder %s182_s1, %s125_s25  ;;  %p129_p0 = scmp.lt.u32.totalorder %s125_s25, %s182_s1 }
  0xa0   :  { %p131_p1 = pnand %p129_p0, %p126_p13 }
  0xa2   :  { %134 = shalt.err (!%p131_p1)
}
  0xa3   :  { %80 = dma.vmem_to_hbm [thread:$0]  %s78_s21, 384, %s182_s1, [#allocation4]  }
  0xa4   :  { %137 = dma.done.wait [#allocation4], 384  }
  0xa5   :  { %138 = vsyncadd [#allocation4], 4294966912 }
  0xa6   :  { %84 = vsyncpa [#allocation3], 1 }
  0xa7   :  { %85 = vsyncpa [#allocation4], 1 }

</bundles_post_ra>
